<compile_context>
chip_gen: v6e
topology: v6e:2x2x1
jax: 0.10.0
libtpu: 0.0.40
codegen_flags: <defaults>
</compile_context>

<pallas_src>
import jax
import jax.numpy as jnp
from jax import lax
from jax.experimental import pallas as pl
from jax.experimental.pallas import tpu as pltpu

Protein_Max_Length = 128   # global constant used by the reference module
_FC3_PAD = 128             # lane-dense padding for the STN fc3 output (real width = 9)
_CIN_PAD = 8               # input-channel padding (real width = 3)
_C1_PAD = 128              # conv1 output channels padded 64 -> 128 (lane-dense intermediates)
_FC_SPLIT_B = 16           # batch size at which the STN FC head moves out of the conv kernel


# --------------------------------------------------------------------------
# helpers
# --------------------------------------------------------------------------
def _round_up(x, m):
    return ((x + m - 1) // m) * m


def _choose_point_tile(n, max_tile=2048, single_tile_max=4096):
    """Point-axis tile TN (multiple of 8) and the padded point count.

    Full-N single tile whenever it fits comfortably in VMEM (<= ~4096 points),
    otherwise 2048-point tiles (per-grid-step overhead dominated at small tiles).
    """
    if n <= single_tile_max:
        tn = _round_up(max(n, 8), 8)
        return tn, tn
    return max_tile, _round_up(n, max_tile)


def _full_spec(arr):
    """Whole-array BlockSpec with a constant index_map (stays resident in VMEM)."""
    nd = arr.ndim
    return pl.BlockSpec(arr.shape, lambda b, i, _nd=nd: (0,) * _nd)


def _conv_stack(x, w1, b1, w2, b2, w3, b3, relu_last):
    """Fused conv1/2/3 (+BN folded) on one point tile.

    x: (TN, _CIN_PAD) bf16; weights bf16; biases f32.  MXU accumulation is f32 and all
    elementwise math (bias-add / relu) stays in f32; operands are cast to bf16 at each dot.
    """
    h = jnp.dot(x, w1, preferred_element_type=jnp.float32) + b1
    h = jnp.maximum(h, 0.0)                                            # relu(bn1(conv1))
    h = jnp.dot(h.astype(jnp.bfloat16), w2, preferred_element_type=jnp.float32) + b2
    h = jnp.maximum(h, 0.0)                                            # relu(bn2(conv2))
    h = jnp.dot(h.astype(jnp.bfloat16), w3, preferred_element_type=jnp.float32) + b3
    if relu_last:
        h = jnp.maximum(h, 0.0)                                        # relu(bn3(conv3))
    return h                                                           # (TN, P) f32


def _masked_tile_max(h, i, TN, N_pad, n_valid):
    """Max over the point axis of one tile, masking zero-padded points."""
    if N_pad != n_valid:
        # Padded points only exist in the final tile; with TN >= 2048 (or full-N single
        # tile) this mask is a tiny fraction of the tile's matmul work, so it is applied
        # unconditionally instead of being gated behind control flow on the tile index.
        row = lax.broadcasted_iota(jnp.int32, h.shape, 0) + i * TN
        h = jnp.where(row < n_valid, h, -jnp.inf)
    return jnp.max(h, axis=0, keepdims=True)                           # (1, P) f32


# --------------------------------------------------------------------------
# Kernel 1: fused STN3d (conv1/2/3 + bn + relu -> max over points -> fc1/2/3)
# --------------------------------------------------------------------------
def stn_fused_forward(x_bnc, params, *, TN, n_valid):
    """x_bnc: (B, N_pad, _CIN_PAD) bf16 (zero padded past n_valid). Returns (B, _FC3_PAD) f32."""
    B, N_pad, Cin = x_bnc.shape
    n_tiles = N_pad // TN
    cw1, cb1 = params["stn_c1"]
    cw2, cb2 = params["stn_c2"]
    cw3, cb3 = params["stn_c3"]
    fw1, fb1 = params["stn_f1"]
    fw2, fb2 = params["stn_f2"]
    fw3, fb3 = params["stn_f3"]          # zero-padded to _FC3_PAD columns
    P = cw3.shape[1]

    def kernel(x_ref, cw1r, cb1r, cw2r, cb2r, cw3r, cb3r,
               fw1r, fb1r, fw2r, fb2r, fw3r, fb3r, out_ref, feat_sc):
        i = pl.program_id(1)
        h = _conv_stack(x_ref[0], cw1r[...], cb1r[...], cw2r[...], cb2r[...],
                        cw3r[...], cb3r[...], relu_last=True)
        tile_max = _masked_tile_max(h, i, TN, N_pad, n_valid)

        @pl.when(i == 0)
        def _():
            feat_sc[...] = tile_max

        @pl.when(i > 0)
        def _():
            feat_sc[...] = jnp.maximum(feat_sc[...], tile_max)

        @pl.when(i == pl.num_programs(1) - 1)
        def _():
            g = jnp.dot(feat_sc[...].astype(jnp.bfloat16), fw1r[...],
                        preferred_element_type=jnp.float32) + fb1r[...]
            g = jnp.maximum(g, 0.0)                                    # relu(bn4(fc1))
            g = jnp.dot(g.astype(jnp.bfloat16), fw2r[...],
                        preferred_element_type=jnp.float32) + fb2r[...]
            g = jnp.maximum(g, 0.0)                                    # relu(bn5(fc2))
            out_ref[0] = jnp.dot(g.astype(jnp.bfloat16), fw3r[...],
                                 preferred_element_type=jnp.float32) + fb3r[...]

    weights = (cw1, cb1, cw2, cb2, cw3, cb3, fw1, fb1, fw2, fb2, fw3, fb3)
    flops = 2 * B * N_pad * (Cin * _C1_PAD + _C1_PAD * 128 + 128 * P) \
        + 2 * B * (P * 512 + 512 * 256 + 256 * _FC3_PAD)
    bytes_acc = 2 * x_bnc.size + sum(int(w.size) * w.dtype.itemsize for w in weights) \
        + 4 * B * _FC3_PAD

    out = pl.pallas_call(
        kernel,
        out_shape=jax.ShapeDtypeStruct((B, 1, _FC3_PAD), jnp.float32),
        grid=(B, n_tiles),
        in_specs=[pl.BlockSpec((1, TN, Cin), lambda b, i: (b, i, 0))]
        + [_full_spec(w) for w in weights],
        out_specs=pl.BlockSpec((1, 1, _FC3_PAD), lambda b, i: (b, 0, 0)),
        scratch_shapes=[pltpu.VMEM((1, P), jnp.float32)],
        compiler_params=pltpu.CompilerParams(
            dimension_semantics=("parallel", "arbitrary")),
        cost_estimate=pl.CostEstimate(
            flops=int(flops), transcendentals=0, bytes_accessed=int(bytes_acc)),
    )(x_bnc, *weights)
    return out.reshape(B, _FC3_PAD)


# --------------------------------------------------------------------------
# Kernel 2: generic conv stack + running max over point tiles
#   used for the encoder trunk (per-batch folded conv1 weight, no relu on conv3)
#   and for the STN conv/pool stage when the FC head is split out (B >= _FC_SPLIT_B).
# --------------------------------------------------------------------------
def conv_max_forward(x_bnc, w1_b, b1, w2, b2, w3, b3, *, relu_last, TN, n_valid):
    """x_bnc: (B, N_pad, _CIN_PAD) bf16; w1_b: (1 or B, _CIN_PAD, C1) bf16.  Returns (B, P) f32."""
    B, N_pad, Cin = x_bnc.shape
    n_tiles = N_pad // TN
    C1 = w1_b.shape[2]
    P = w3.shape[1]
    per_batch = (w1_b.shape[0] == B) and (B > 1)
    w1_map = (lambda b, i: (b, 0, 0)) if per_batch else (lambda b, i: (0, 0, 0))

    def kernel(x_ref, w1r, b1r, w2r, b2r, w3r, b3r, out_ref):
        i = pl.program_id(1)
        h = _conv_stack(x_ref[0], w1r[0], b1r[...], w2r[...], b2r[...],
                        w3r[...], b3r[...], relu_last=relu_last)
        tile_max = _masked_tile_max(h, i, TN, N_pad, n_valid)

        @pl.when(i == 0)
        def _():
            out_ref[0] = tile_max

        @pl.when(i > 0)
        def _():
            out_ref[0] = jnp.maximum(out_ref[0], tile_max)

    shared = (b1, w2, b2, w3, b3)
    flops = 2 * B * N_pad * (Cin * C1 + C1 * w2.shape[1] + w2.shape[1] * P)
    bytes_acc = 2 * (x_bnc.size + w1_b.size) \
        + sum(int(w.size) * w.dtype.itemsize for w in shared) + 4 * B * P

    out = pl.pallas_call(
        kernel,
        out_shape=jax.ShapeDtypeStruct((B, 1, P), jnp.float32),
        grid=(B, n_tiles),
        in_specs=[pl.BlockSpec((1, TN, Cin), lambda b, i: (b, i, 0)),
                  pl.BlockSpec((1, w1_b.shape[1], C1), w1_map)]
        + [_full_spec(w) for w in shared],
        out_specs=pl.BlockSpec((1, 1, P), lambda b, i: (b, 0, 0)),
        compiler_params=pltpu.CompilerParams(
            dimension_semantics=("parallel", "arbitrary")),
        cost_estimate=pl.CostEstimate(
            flops=int(flops), transcendentals=0, bytes_accessed=int(bytes_acc)),
    )(x_bnc, w1_b, *shared)
    return out.reshape(B, P)


def _stn_fc_head(pooled_f32, params):
    """STN fc1/fc2/fc3 as batched XLA matmuls (used only when B >= _FC_SPLIT_B)."""
    fw1, fb1 = params["stn_f1"]
    fw2, fb2 = params["stn_f2"]
    fw3, fb3 = params["stn_f3"]
    g = jnp.dot(pooled_f32.astype(jnp.bfloat16), fw1,
                preferred_element_type=jnp.float32) + fb1
    g = jnp.maximum(g, 0.0)
    g = jnp.dot(g.astype(jnp.bfloat16), fw2, preferred_element_type=jnp.float32) + fb2
    g = jnp.maximum(g, 0.0)
    return jnp.dot(g.astype(jnp.bfloat16), fw3, preferred_element_type=jnp.float32) + fb3


# --------------------------------------------------------------------------
# Parameter construction (deterministic, BN folded, padded + cast to bf16)
# --------------------------------------------------------------------------
def _dense_params(key, cin, cout, with_bn):
    ks = jax.random.split(key, 6)
    w = jax.random.normal(ks[0], (cin, cout), jnp.float32) * (1.0 / (cin ** 0.5))
    b = jax.random.normal(ks[1], (cout,), jnp.float32) * 0.1
    if with_bn:
        gamma = 1.0 + 0.1 * jax.random.normal(ks[2], (cout,), jnp.float32)
        beta = 0.1 * jax.random.normal(ks[3], (cout,), jnp.float32)
        mean = 0.1 * jax.random.normal(ks[4], (cout,), jnp.float32)
        var = 1.0 + 0.1 * jnp.abs(jax.random.normal(ks[5], (cout,), jnp.float32))
        scale = gamma / jnp.sqrt(var + 1e-5)
        w = w * scale[None, :]
        b = (b - mean) * scale + beta
    return w, b.reshape(1, cout)


def _pad2(a, rows, cols):
    return jnp.pad(a, ((0, rows - a.shape[0]), (0, cols - a.shape[1])))


def make_params(key, channel, P):
    names_specs = [
        # STN3d
        ("stn_c1", channel, 64, True), ("stn_c2", 64, 128, True), ("stn_c3", 128, P, True),
        ("stn_f1", P, 512, True), ("stn_f2", 512, 256, True), ("stn_f3", 256, 9, False),
        # encoder trunk
        ("enc_c1", channel, 64, True), ("enc_c2", 64, 128, True), ("enc_c3", 128, P, True),
    ]
    keys = jax.random.split(key, len(names_specs))
    raw = {}
    for k, (name, cin, cout, bn) in zip(keys, names_specs):
        raw[name] = _dense_params(k, cin, cout, bn)

    params = {}
    for name, (w, b) in raw.items():
        if name in ("stn_c1", "enc_c1"):
            # Cin 3 -> 8 (aligned DMA rows) and Cout 64 -> 128 (lane-dense conv1 output).
            w = _pad2(w, _CIN_PAD, _C1_PAD)
            b = _pad2(b, 1, _C1_PAD)
        elif name in ("stn_c2", "enc_c2"):
            # match conv1's padded output channels; padded rows are zero (no-op).
            w = _pad2(w, _C1_PAD, w.shape[1])
        elif name == "stn_f3":
            # pad out_dim 9 -> 128 so the final store is lane-dense (wrapper slices [:9]).
            w = _pad2(w, w.shape[0], _FC3_PAD)
            b = _pad2(b, 1, _FC3_PAD)
        # bf16 MXU operands; biases stay f32 (elementwise math in f32, v5e-safe).
        params[name] = (w.astype(jnp.bfloat16), b.astype(jnp.float32))
    return params


# --------------------------------------------------------------------------
# Forward pass (layout plumbing in plain JAX, hot math in the Pallas kernels)
# --------------------------------------------------------------------------
def pointnet_encoder_forward(x_bdn, params):
    """x_bdn: (B, D, N) float32, matching the PyTorch Conv1d input layout."""
    B, D, N = x_bdn.shape
    x_bnc = jnp.transpose(x_bdn, (0, 2, 1)).astype(jnp.float32)       # (B, N, C) channel-last

    TN, N_pad = _choose_point_tile(N)
    pad_n, pad_c = N_pad - N, _CIN_PAD - D
    if pad_n or pad_c:
        x_bnc = jnp.pad(x_bnc, ((0, 0), (0, pad_n), (0, pad_c)))
    x_bnc = x_bnc.astype(jnp.bfloat16)       # bf16 MXU operands; accumulation stays f32

    # ---- STN3d ----
    if B < _FC_SPLIT_B:
        # fused: conv stack + max + FC head in one launch (FC head M=1 is fine at tiny B)
        stn_out = stn_fused_forward(x_bnc, params, TN=TN, n_valid=N)   # (B, _FC3_PAD)
    else:
        # large B: pooled max from the generic kernel, FC head batched over B outside
        cw1, cb1 = params["stn_c1"]
        cw2, cb2 = params["stn_c2"]
        cw3, cb3 = params["stn_c3"]
        pooled = conv_max_forward(x_bnc, cw1.reshape(1, _CIN_PAD, _C1_PAD), cb1,
                                  cw2, cb2, cw3, cb3,
                                  relu_last=True, TN=TN, n_valid=N)    # (B, 128)
        stn_out = _stn_fc_head(pooled, params)                         # (B, _FC3_PAD)

    iden = jnp.eye(3, dtype=jnp.float32).reshape(1, 9)
    trans = (stn_out[:, :9] + iden).reshape(B, 3, 3)

    # ---- main trunk: 3x3 transform folded into conv1 ONCE per batch element (hoisted) ----
    w1, b1 = params["enc_c1"]
    w2, b2 = params["enc_c2"]
    w3, b3 = params["enc_c3"]
    w1_real = w1[:3, :].astype(jnp.float32)                            # (3, _C1_PAD)
    w1eff = jnp.einsum("bij,jk->bik", trans, w1_real)                  # (B, 3, _C1_PAD)
    w1eff = jnp.pad(w1eff, ((0, 0), (0, _CIN_PAD - 3), (0, 0))).astype(jnp.bfloat16)

    feat = conv_max_forward(x_bnc, w1eff, b1, w2, b2, w3, b3,
                            relu_last=False, TN=TN, n_valid=N)         # (B, Protein_Max_Length)

    trans_feat = None  # feature_transform=False
    return feat, trans, trans_feat


if __name__ == "__main__":
    B, channel, N = 2, 3, 16
    P = Protein_Max_Length

    key = jax.random.PRNGKey(0)
    k_params, k_x = jax.random.split(key)
    params = make_params(k_params, channel, P)
    x = jax.random.normal(k_x, (B, channel, N), jnp.float32)           # (B, D, N) like PyTorch

    feat, trans, trans_feat = pointnet_encoder_forward(x, params)
    feat, trans = jax.block_until_ready((feat, trans))

    assert feat.shape == (B, P) and feat.dtype == jnp.float32
    assert trans.shape == (B, 3, 3) and trans.dtype == jnp.float32
    assert trans_feat is None
    assert bool(jnp.all(jnp.isfinite(feat))) and bool(jnp.all(jnp.isfinite(trans)))
    print("KERNEL_OK")
</pallas_src>

<mosaic_0001>
module attributes {stable_mosaic.version = 11 : i64} {
  func.func @kernel(%arg0: i32, %arg1: i32, %arg2: memref<1x16x8xbf16, #tpu.memory_space<vmem>>, %arg3: memref<8x128xbf16, #tpu.memory_space<vmem>>, %arg4: memref<1x128xf32, #tpu.memory_space<vmem>>, %arg5: memref<128x128xbf16, #tpu.memory_space<vmem>>, %arg6: memref<1x128xf32, #tpu.memory_space<vmem>>, %arg7: memref<128x128xbf16, #tpu.memory_space<vmem>>, %arg8: memref<1x128xf32, #tpu.memory_space<vmem>>, %arg9: memref<128x512xbf16, #tpu.memory_space<vmem>>, %arg10: memref<1x512xf32, #tpu.memory_space<vmem>>, %arg11: memref<512x256xbf16, #tpu.memory_space<vmem>>, %arg12: memref<1x256xf32, #tpu.memory_space<vmem>>, %arg13: memref<256x128xbf16, #tpu.memory_space<vmem>>, %arg14: memref<1x128xf32, #tpu.memory_space<vmem>>, %arg15: memref<1x1x128xf32, #tpu.memory_space<vmem>>, %arg16: memref<1x128xf32, #tpu.memory_space<vmem>>) attributes {dimension_semantics = [#tpu.dimension_semantics<parallel>, #tpu.dimension_semantics<arbitrary>], iteration_bounds = array<i64: 2, 1>, scalar_prefetch = 0 : i64, scratch_operands = 1 : i64, tpu.core_type = #tpu.core_type<tc>, window_params = [{transform_indices = @transform_0, window_bounds = array<i64: 1, 16, 8>}, {pipeline_mode = #tpu.pipeline_mode<synchronous>, transform_indices = @transform_1, window_bounds = array<i64: 8, 128>}, {pipeline_mode = #tpu.pipeline_mode<synchronous>, transform_indices = @transform_2, window_bounds = array<i64: 1, 128>}, {pipeline_mode = #tpu.pipeline_mode<synchronous>, transform_indices = @transform_3, window_bounds = array<i64: 128, 128>}, {pipeline_mode = #tpu.pipeline_mode<synchronous>, transform_indices = @transform_4, window_bounds = array<i64: 1, 128>}, {pipeline_mode = #tpu.pipeline_mode<synchronous>, transform_indices = @transform_5, window_bounds = array<i64: 128, 128>}, {pipeline_mode = #tpu.pipeline_mode<synchronous>, transform_indices = @transform_6, window_bounds = array<i64: 1, 128>}, {pipeline_mode = #tpu.pipeline_mode<synchronous>, transform_indices = @transform_7, window_bounds = array<i64: 128, 512>}, {pipeline_mode = #tpu.pipeline_mode<synchronous>, transform_indices = @transform_8, window_bounds = array<i64: 1, 512>}, {pipeline_mode = #tpu.pipeline_mode<synchronous>, transform_indices = @transform_9, window_bounds = array<i64: 512, 256>}, {pipeline_mode = #tpu.pipeline_mode<synchronous>, transform_indices = @transform_10, window_bounds = array<i64: 1, 256>}, {pipeline_mode = #tpu.pipeline_mode<synchronous>, transform_indices = @transform_11, window_bounds = array<i64: 256, 128>}, {pipeline_mode = #tpu.pipeline_mode<synchronous>, transform_indices = @transform_12, window_bounds = array<i64: 1, 128>}, {transform_indices = @transform_13, window_bounds = array<i64: 1, 1, 128>}]} {
    %c0 = arith.constant 0 : index
    %c0_0 = arith.constant 0 : index
    %c0_1 = arith.constant 0 : index
    %0 = vector.load %arg2[%c0, %c0_0, %c0_1] : memref<1x16x8xbf16, #tpu.memory_space<vmem>>, vector<1x16x8xbf16>
    %1 = vector.shape_cast %0 : vector<1x16x8xbf16> to vector<16x8xbf16>
    %c0_2 = arith.constant 0 : index
    %c0_3 = arith.constant 0 : index
    %2 = vector.load %arg3[%c0_2, %c0_3] : memref<8x128xbf16, #tpu.memory_space<vmem>>, vector<8x128xbf16>
    %c0_4 = arith.constant 0 : index
    %c0_5 = arith.constant 0 : index
    %3 = vector.load %arg4[%c0_4, %c0_5] : memref<1x128xf32, #tpu.memory_space<vmem>>, vector<1x128xf32>
    %c0_6 = arith.constant 0 : index
    %c0_7 = arith.constant 0 : index
    %4 = vector.load %arg5[%c0_6, %c0_7] : memref<128x128xbf16, #tpu.memory_space<vmem>>, vector<128x128xbf16>
    %c0_8 = arith.constant 0 : index
    %c0_9 = arith.constant 0 : index
    %5 = vector.load %arg6[%c0_8, %c0_9] : memref<1x128xf32, #tpu.memory_space<vmem>>, vector<1x128xf32>
    %c0_10 = arith.constant 0 : index
    %c0_11 = arith.constant 0 : index
    %6 = vector.load %arg7[%c0_10, %c0_11] : memref<128x128xbf16, #tpu.memory_space<vmem>>, vector<128x128xbf16>
    %c0_12 = arith.constant 0 : index
    %c0_13 = arith.constant 0 : index
    %7 = vector.load %arg8[%c0_12, %c0_13] : memref<1x128xf32, #tpu.memory_space<vmem>>, vector<1x128xf32>
    %cst = arith.constant dense<0.000000e+00> : vector<16x128xf32>
    %8 = tpu.matmul %1, %2, %cst {dimension_numbers = #tpu.dot_dimension_numbers<[1], [0], [0], [1], [0, 0, 1, 1], [], []>} : vector<16x8xbf16>, vector<8x128xbf16>, vector<16x128xf32> -> vector<16x128xf32>
    %9 = vector.broadcast %3 : vector<1x128xf32> to vector<16x128xf32>
    %10 = arith.addf %8, %9 : vector<16x128xf32>
    %cst_14 = arith.constant 0.000000e+00 : f32
    %11 = vector.broadcast %cst_14 : f32 to vector<16x128xf32>
    %12 = arith.maximumf %10, %11 : vector<16x128xf32>
    %13 = arith.truncf %12 : vector<16x128xf32> to vector<16x128xbf16>
    %cst_15 = arith.constant dense<0.000000e+00> : vector<16x128xf32>
    %14 = tpu.matmul %13, %4, %cst_15 {dimension_numbers = #tpu.dot_dimension_numbers<[1], [0], [0], [1], [0, 0, 1, 1], [], []>} : vector<16x128xbf16>, vector<128x128xbf16>, vector<16x128xf32> -> vector<16x128xf32>
    %15 = vector.broadcast %5 : vector<1x128xf32> to vector<16x128xf32>
    %16 = arith.addf %14, %15 : vector<16x128xf32>
    %cst_16 = arith.constant 0.000000e+00 : f32
    %17 = vector.broadcast %cst_16 : f32 to vector<16x128xf32>
    %18 = arith.maximumf %16, %17 : vector<16x128xf32>
    %19 = arith.truncf %18 : vector<16x128xf32> to vector<16x128xbf16>
    %cst_17 = arith.constant dense<0.000000e+00> : vector<16x128xf32>
    %20 = tpu.matmul %19, %6, %cst_17 {dimension_numbers = #tpu.dot_dimension_numbers<[1], [0], [0], [1], [0, 0, 1, 1], [], []>} : vector<16x128xbf16>, vector<128x128xbf16>, vector<16x128xf32> -> vector<16x128xf32>
    %21 = vector.broadcast %7 : vector<1x128xf32> to vector<16x128xf32>
    %22 = arith.addf %20, %21 : vector<16x128xf32>
    %cst_18 = arith.constant 0.000000e+00 : f32
    %23 = vector.broadcast %cst_18 : f32 to vector<16x128xf32>
    %24 = arith.maximumf %22, %23 : vector<16x128xf32>
    %cst_19 = arith.constant dense<0xFF800000> : vector<128xf32>
    %25 = vector.multi_reduction <maximumf>, %24, %cst_19 [0] : vector<16x128xf32> to vector<128xf32>
    %26 = vector.shape_cast %25 : vector<128xf32> to vector<1x128xf32>
    %c0_i32 = arith.constant 0 : i32
    %27 = arith.cmpi eq, %arg1, %c0_i32 : i32
    %28 = arith.extui %27 : i1 to i32
    %c0_i32_20 = arith.constant 0 : i32
    %29 = arith.cmpi ne, %28, %c0_i32_20 : i32
    scf.if %29 {
      %c0_25 = arith.constant 0 : index
      %c0_26 = arith.constant 0 : index
      %36 = vector.load %arg16[%c0_25, %c0_26] : memref<1x128xf32, #tpu.memory_space<vmem>>, vector<1x128xf32>
      tpu.vector_store %arg16[%c0_25, %c0_26], %26 {strides = array<i32>} : memref<1x128xf32, #tpu.memory_space<vmem>>, vector<1x128xf32>,
    } else {
    }
    %c0_i32_21 = arith.constant 0 : i32
    %30 = arith.cmpi sgt, %arg1, %c0_i32_21 : i32
    %31 = arith.extui %30 : i1 to i32
    %c0_i32_22 = arith.constant 0 : i32
    %32 = arith.cmpi ne, %31, %c0_i32_22 : i32
    scf.if %32 {
      %c0_25 = arith.constant 0 : index
      %c0_26 = arith.constant 0 : index
      %36 = vector.load %arg16[%c0_25, %c0_26] : memref<1x128xf32, #tpu.memory_space<vmem>>, vector<1x128xf32>
      %37 = arith.maximumf %36, %26 : vector<1x128xf32>
      %c0_27 = arith.constant 0 : index
      %c0_28 = arith.constant 0 : index
      %38 = vector.load %arg16[%c0_27, %c0_28] : memref<1x128xf32, #tpu.memory_space<vmem>>, vector<1x128xf32>
      tpu.vector_store %arg16[%c0_27, %c0_28], %37 {strides = array<i32>} : memref<1x128xf32, #tpu.memory_space<vmem>>, vector<1x128xf32>,
    } else {
    }
    %c0_i32_23 = arith.constant 0 : i32
    %33 = arith.cmpi eq, %arg1, %c0_i32_23 : i32
    %34 = arith.extui %33 : i1 to i32
    %c0_i32_24 = arith.constant 0 : i32
    %35 = arith.cmpi ne, %34, %c0_i32_24 : i32
    scf.if %35 {
      %c0_25 = arith.constant 0 : index
      %c0_26 = arith.constant 0 : index
      %36 = vector.load %arg16[%c0_25, %c0_26] : memref<1x128xf32, #tpu.memory_space<vmem>>, vector<1x128xf32>
      %37 = arith.truncf %36 : vector<1x128xf32> to vector<1x128xbf16>
      %c0_27 = arith.constant 0 : index
      %c0_28 = arith.constant 0 : index
      %38 = vector.load %arg9[%c0_27, %c0_28] : memref<128x512xbf16, #tpu.memory_space<vmem>>, vector<128x512xbf16>
      %cst_29 = arith.constant dense<0.000000e+00> : vector<1x512xf32>
      %39 = tpu.matmul %37, %38, %cst_29 {dimension_numbers = #tpu.dot_dimension_numbers<[1], [0], [0], [1], [0, 0, 1, 1], [], []>} : vector<1x128xbf16>, vector<128x512xbf16>, vector<1x512xf32> -> vector<1x512xf32>
      %c0_30 = arith.constant 0 : index
      %c0_31 = arith.constant 0 : index
      %40 = vector.load %arg10[%c0_30, %c0_31] : memref<1x512xf32, #tpu.memory_space<vmem>>, vector<1x512xf32>
      %41 = arith.addf %39, %40 : vector<1x512xf32>
      %cst_32 = arith.constant 0.000000e+00 : f32
      %42 = vector.broadcast %cst_32 : f32 to vector<1x512xf32>
      %43 = arith.maximumf %41, %42 : vector<1x512xf32>
      %44 = arith.truncf %43 : vector<1x512xf32> to vector<1x512xbf16>
      %c0_33 = arith.constant 0 : index
      %c0_34 = arith.constant 0 : index
      %45 = vector.load %arg11[%c0_33, %c0_34] : memref<512x256xbf16, #tpu.memory_space<vmem>>, vector<512x256xbf16>
      %cst_35 = arith.constant dense<0.000000e+00> : vector<1x256xf32>
      %46 = tpu.matmul %44, %45, %cst_35 {dimension_numbers = #tpu.dot_dimension_numbers<[1], [0], [0], [1], [0, 0, 1, 1], [], []>} : vector<1x512xbf16>, vector<512x256xbf16>, vector<1x256xf32> -> vector<1x256xf32>
      %c0_36 = arith.constant 0 : index
      %c0_37 = arith.constant 0 : index
      %47 = vector.load %arg12[%c0_36, %c0_37] : memref<1x256xf32, #tpu.memory_space<vmem>>, vector<1x256xf32>
      %48 = arith.addf %46, %47 : vector<1x256xf32>
      %cst_38 = arith.constant 0.000000e+00 : f32
      %49 = vector.broadcast %cst_38 : f32 to vector<1x256xf32>
      %50 = arith.maximumf %48, %49 : vector<1x256xf32>
      %51 = arith.truncf %50 : vector<1x256xf32> to vector<1x256xbf16>
      %c0_39 = arith.constant 0 : index
      %c0_40 = arith.constant 0 : index
      %52 = vector.load %arg13[%c0_39, %c0_40] : memref<256x128xbf16, #tpu.memory_space<vmem>>, vector<256x128xbf16>
      %cst_41 = arith.constant dense<0.000000e+00> : vector<1x128xf32>
      %53 = tpu.matmul %51, %52, %cst_41 {dimension_numbers = #tpu.dot_dimension_numbers<[1], [0], [0], [1], [0, 0, 1, 1], [], []>} : vector<1x256xbf16>, vector<256x128xbf16>, vector<1x128xf32> -> vector<1x128xf32>
      %c0_42 = arith.constant 0 : index
      %c0_43 = arith.constant 0 : index
      %54 = vector.load %arg14[%c0_42, %c0_43] : memref<1x128xf32, #tpu.memory_space<vmem>>, vector<1x128xf32>
      %55 = arith.addf %53, %54 : vector<1x128xf32>
      %c0_44 = arith.constant 0 : index
      %c0_45 = arith.constant 0 : index
      %c0_46 = arith.constant 0 : index
      %56 = vector.load %arg15[%c0_44, %c0_45, %c0_46] : memref<1x1x128xf32, #tpu.memory_space<vmem>>, vector<1x1x128xf32>
      %57 = vector.shape_cast %56 : vector<1x1x128xf32> to vector<1x128xf32>
      %58 = vector.shape_cast %55 : vector<1x128xf32> to vector<1x1x128xf32>
      tpu.vector_store %arg15[%c0_44, %c0_45, %c0_46], %58 {strides = array<i32>} : memref<1x1x128xf32, #tpu.memory_space<vmem>>, vector<1x1x128xf32>,
    } else {
    }
    return
  }
  func.func @transform_0(%arg0: i32, %arg1: i32) -> (i32, i32, i32) {
    %c0_i32 = arith.constant 0 : i32
    %c0_i32_0 = arith.constant 0 : i32
    return %arg0, %arg1, %c0_i32 : i32, i32, i32
  }
  func.func @transform_1(%arg0: i32, %arg1: i32) -> (i32, i32) {
    %c0_i32 = arith.constant 0 : i32
    %c0_i32_0 = arith.constant 0 : i32
    %c0_i32_1 = arith.constant 0 : i32
    return %c0_i32, %c0_i32_0 : i32, i32
  }
  func.func @transform_2(%arg0: i32, %arg1: i32) -> (i32, i32) {
    %c0_i32 = arith.constant 0 : i32
    %c0_i32_0 = arith.constant 0 : i32
    %c0_i32_1 = arith.constant 0 : i32
    return %c0_i32, %c0_i32_0 : i32, i32
  }
  func.func @transform_3(%arg0: i32, %arg1: i32) -> (i32, i32) {
    %c0_i32 = arith.constant 0 : i32
    %c0_i32_0 = arith.constant 0 : i32
    %c0_i32_1 = arith.constant 0 : i32
    return %c0_i32, %c0_i32_0 : i32, i32
  }
  func.func @transform_4(%arg0: i32, %arg1: i32) -> (i32, i32) {
    %c0_i32 = arith.constant 0 : i32
    %c0_i32_0 = arith.constant 0 : i32
    %c0_i32_1 = arith.constant 0 : i32
    return %c0_i32, %c0_i32_0 : i32, i32
  }
  func.func @transform_5(%arg0: i32, %arg1: i32) -> (i32, i32) {
    %c0_i32 = arith.constant 0 : i32
    %c0_i32_0 = arith.constant 0 : i32
    %c0_i32_1 = arith.constant 0 : i32
    return %c0_i32, %c0_i32_0 : i32, i32
  }
  func.func @transform_6(%arg0: i32, %arg1: i32) -> (i32, i32) {
    %c0_i32 = arith.constant 0 : i32
    %c0_i32_0 = arith.constant 0 : i32
    %c0_i32_1 = arith.constant 0 : i32
    return %c0_i32, %c0_i32_0 : i32, i32
  }
  func.func @transform_7(%arg0: i32, %arg1: i32) -> (i32, i32) {
    %c0_i32 = arith.constant 0 : i32
    %c0_i32_0 = arith.constant 0 : i32
    %c0_i32_1 = arith.constant 0 : i32
    return %c0_i32, %c0_i32_0 : i32, i32
  }
  func.func @transform_8(%arg0: i32, %arg1: i32) -> (i32, i32) {
    %c0_i32 = arith.constant 0 : i32
    %c0_i32_0 = arith.constant 0 : i32
    %c0_i32_1 = arith.constant 0 : i32
    return %c0_i32, %c0_i32_0 : i32, i32
  }
  func.func @transform_9(%arg0: i32, %arg1: i32) -> (i32, i32) {
    %c0_i32 = arith.constant 0 : i32
    %c0_i32_0 = arith.constant 0 : i32
    %c0_i32_1 = arith.constant 0 : i32
    return %c0_i32, %c0_i32_0 : i32, i32
  }
  func.func @transform_10(%arg0: i32, %arg1: i32) -> (i32, i32) {
    %c0_i32 = arith.constant 0 : i32
    %c0_i32_0 = arith.constant 0 : i32
    %c0_i32_1 = arith.constant 0 : i32
    return %c0_i32, %c0_i32_0 : i32, i32
  }
  func.func @transform_11(%arg0: i32, %arg1: i32) -> (i32, i32) {
    %c0_i32 = arith.constant 0 : i32
    %c0_i32_0 = arith.constant 0 : i32
    %c0_i32_1 = arith.constant 0 : i32
    return %c0_i32, %c0_i32_0 : i32, i32
  }
  func.func @transform_12(%arg0: i32, %arg1: i32) -> (i32, i32) {
    %c0_i32 = arith.constant 0 : i32
    %c0_i32_0 = arith.constant 0 : i32
    %c0_i32_1 = arith.constant 0 : i32
    return %c0_i32, %c0_i32_0 : i32, i32
  }
  func.func @transform_13(%arg0: i32, %arg1: i32) -> (i32, i32, i32) {
    %c0_i32 = arith.constant 0 : i32
    %c0_i32_0 = arith.constant 0 : i32
    %c0_i32_1 = arith.constant 0 : i32
    return %arg0, %c0_i32, %c0_i32_0 : i32, i32, i32
  }
}

</mosaic_0001>

<bundles_post_ra>
// kernel: tpu_custom_call.1
= control target key start
LH: loop header
LB: loop body
LE: loop exit
PB: predicated region body
PF: predicated region fallthrough
CT: control target
= control target key end

     0   :  { %s3026_s0 = inlined_call_operand.vmem [shape: bf16[2,16,8], index: 0, kind: input, shape index: {}]   ;;  %s3027_s1 = inlined_call_operand.vmem [shape: bf16[8,128], index: 1, kind: input, shape index: {}]   ;;  %s3028_s2 = inlined_call_operand.vmem [shape: f32[1,128], index: 2, kind: input, shape index: {}]   ;;  %s3029_s3 = inlined_call_operand.hbm [shape: bf16[128,128], index: 3, kind: input, shape index: {}]   ;;  %s3030_s4 = inlined_call_operand.vmem [shape: f32[1,128], index: 4, kind: input, shape index: {}]   ;;  %s3031_s5 = inlined_call_operand.hbm [shape: bf16[128,128], index: 5, kind: input, shape index: {}]   ;;  %s3032_s6 = inlined_call_operand.vmem [shape: f32[1,128], index: 6, kind: input, shape index: {}]   ;;  %s3033_s7 = inlined_call_operand.hbm [shape: bf16[128,512], index: 7, kind: input, shape index: {}]   ;;  %s3034_s8 = inlined_call_operand.vmem [shape: f32[1,512], index: 8, kind: input, shape index: {}]   ;;  %s3035_s9 = inlined_call_operand.hbm [shape: bf16[512,256], index: 9, kind: input, shape index: {}]   ;;  %s3036_s10 = inlined_call_operand.vmem [shape: f32[1,256], index: 10, kind: input, shape index: {}]   ;;  %s3037_s11 = inlined_call_operand.hbm [shape: bf16[256,128], index: 11, kind: input, shape index: {}]   ;;  %s3038_s12 = inlined_call_operand.vmem [shape: f32[1,128], index: 12, kind: input, shape index: {}]   ;;  %s3039_s13 = inlined_call_operand.hbm [shape: f32[2,1,128], index: 13, kind: output, shape index: {}]  }
   0x1   :  { %3052 = sst [smem:[#allocation24_spill]] %s3039_s13 }
   0x2   :  { %18 = vsyncpa [#allocation4], 0 }
   0x3   :  { %19 = vsyncpa [#allocation7], 0 }
   0x4   :  { %20 = vsyncpa [#allocation10], 0 }
   0x5   :  { %21 = vsyncpa [#allocation5], 0 }
   0x6   :  { %23 = vsyncpa [#allocation5 + $0x1], 0  ;;  %s2787_s25 = smov 0   ;;  %s2789_s26 = smov 0  }
   0x7   :  { %s2791_s27 = smov 0   ;;  %s2793_s28 = smov 0  }
   0x8   :  { %s2795_s29 = smov 0   ;;  %s2797_s30 = smov 0  }
   0x9 LB: > { %3053 = sst [smem:[#allocation17_spill]] %s2680_s25  ;;  %s1948_s14 = sadd.s32 4294967295, %s2700_s30   ;;  %s2700_s30 = sphi %s2797_s30, %s29_s30   ;;  %s2696_s29 = sphi %s2795_s29, %s3076_s29   ;;  %s2692_s28 = sphi %s2793_s28, %s3075_s28   ;;  %s2688_s27 = sphi %s2791_s27, %s3074_s27   ;;  %s2684_s26 = sphi %s2789_s26, %s3078_s26   ;;  %s2680_s25 = sphi %s2787_s25, %s3077_s25  }
   0xa   : > { %3054 = sst [smem:[#allocation18_spill]] %s2688_s27  ;;  %s1949_s15 = sadd.s32 4294967294, %s2700_s30  }
   0xb   : > { %3055 = sst [smem:[#allocation19_spill]] %s2696_s29  ;;  %s41_s16 = sadd.s32 1, %s2696_s29 }
   0xc   : > { %3056 = sst [smem:[#allocation20_spill]] %s2700_s30  ;;  %s328_s17 = sadd.s32 1, %s2688_s27 }
   0xd   : > { %p43_p0 = scmp.ge.s32.totalorder %s41_s16, 2  ;;  %p338_p1 = scmp.ne.s32.totalorder %s2688_s27, %s2684_s26 }
   0xe   : > { %p339_p2 = scmp.eq.s32.totalorder %s1948_s14, 1  ;;  %p344_p3 = scmp.ne.s32.totalorder %s2684_s26, %s2680_s25 }
   0xf   : > { %s3080_s16 = smov (%p43_p0, %s41_s16), 0  ;;  %p345_p5 = scmp.eq.s32.totalorder %s1949_s15, 1 }
  0x10   : > { %3057 = sst [smem:[#allocation21_spill]] %s3080_s16  ;;  %p2827_p4 = por %p339_p2, %p338_p1 }
  0x11   : > { %s325_s19 = ssub.s32 %s2696_s29, %s3080_s16  ;;  %p1950_p6 = scmp.ge.s32.totalorder %s2700_s30, 1 }
  0x12   : > { %p326_p7 = scmp.eq.s32.totalorder %s325_s19, 0  ;;  %p2834_p8 = por %p345_p5, %p344_p3 }
  0x13   : > { %p352_p9 = scmp.lt.s32.totalorder %s2700_s30, 3  ;;  %p2846_p11 = scmp.eq.s32.totalorder %s1948_s14, 0 }
  0x14   : > { %s3059_s20 = scalar_select %p2834_p8, 1, 0 }
  0x15   : > { %s2840_s21 = scalar_select %p326_p7, %s2688_s27, %s328_s17  }
  0x16   : > { %3060 = sst [smem:[#allocation22_spill]] %s3059_s20  ;;  %p2842_p10 = pnand %p1950_p6, %p352_p9 }
  0x17   : > { %3061 = sst [smem:[#allocation23_spill]] %s2840_s21  ;;  %s2702_s24 = smov [#allocation6]  }
  0x18   : > { %p2212_p12 = pneg %p2842_p10  ;;  %s386_s15 = sshll.u32 %s2702_s24, 4  ;;  %s387_s15 = int_to_ptr.vmem [resolvable:$true] %s386_s15 }
  0x19   : > { %s2703_s17 = smov [#allocation9]   ;;  %s2493_s29 = scalar_lea.vmem %s387_s15, 1024 }
  0x1a   : > { %p2854_p13 = pnand %p2846_p11, %p2212_p12  ;;  %s418_s16 = sshll.u32 %s2703_s17, 4  ;;  %s419_s16 = int_to_ptr.vmem [resolvable:$true] %s418_s16 }
  0x1b   : > { %p2494_p1 = scmp.ne.s32.totalorder %s387_s15, %s2493_s29  ;;  %p2501_p5 = scmp.lt.s32.totalorder %s387_s15, %s387_s15 }
  0x1c   : > { %p2860_p0 = pneg %p2854_p13  ;;  %p2502_p6 = scmp.lt.s32.totalorder %s2493_s29, %s2493_s29 }
  0x1e   : > { %p2496_p2 = pnand %p2494_p1, %p2860_p0  ;;  %p2503_p7 = por %p2502_p6, %p2501_p5 }
  0x20   : > { %p2497_p3 = pneg %p2496_p2 }
  0x22   : > { %p2504_p9 = pnand %p2503_p7, %p2497_p3 }
  0x24   : > { %2507 = shalt.err (!%p2504_p9)
}
  0x25   : > { %s3048_s24 = smov 64   ;;  %s3050_s17 = smov 4  }
  0x26   : > { %2218 = dma.hbm_to_vmem [thread:$0]  (!%p2854_p13), %s3031_s5, 1024, %s387_s15, [#allocation7], %s3048_s24, %s3048_s24, %s3050_s17  }
  0x27   : > { %s2519_s20 = scalar_lea.vmem %s419_s16, 8192  ;;  %p2527_p5 = scmp.lt.s32.totalorder %s419_s16, %s419_s16 }
  0x28   : > { %p2520_p12 = scmp.ne.s32.totalorder %s419_s16, %s2519_s20  ;;  %p2528_p3 = scmp.lt.s32.totalorder %s2519_s20, %s2519_s20 }
  0x2a   : > { %p2522_p1 = pnand %p2520_p12, %p2860_p0  ;;  %p2529_p6 = por %p2528_p3, %p2527_p5 }
  0x2c   : > { %p2523_p2 = pneg %p2522_p1 }
  0x2e   : > { %p2530_p7 = pnand %p2529_p6, %p2523_p2 }
  0x30   : > { %2533 = shalt.err (!%p2530_p7)
}
  0x31   : > { %s2706_s29 = smov 128   ;;  %s2707_s25 = smov 8  }
  0x32   : > { %2224 = dma.hbm_to_vmem [thread:$0]  (!%p2854_p13), %s3035_s9, 8192, %s419_s16, [#allocation10], %s2706_s29, %s2706_s29, %s2707_s25  }
  0x33   : > { %s2708_s27 = smov [#allocation3]   ;;  %s2709_s15 = smov [#allocation8]  }
  0x34   : > { %s370_s21 = sshll.u32 %s2708_s27, 4  ;;  %s402_s24 = sshll.u32 %s2709_s15, 4  ;;  %s371_s21 = int_to_ptr.vmem [resolvable:$true] %s370_s21  ;;  %s403_s24 = int_to_ptr.vmem [resolvable:$true] %s402_s24 }
  0x35   : > { %s2545_s17 = scalar_lea.vmem %s371_s21, 1024  ;;  %p2553_p2 = scmp.lt.s32.totalorder %s371_s21, %s371_s21 }
  0x36   : > { %p2546_p9 = scmp.ne.s32.totalorder %s371_s21, %s2545_s17  ;;  %p2554_p5 = scmp.lt.s32.totalorder %s2545_s17, %s2545_s17 }
  0x38   : > { %p2548_p12 = pnand %p2546_p9, %p2860_p0  ;;  %p2555_p3 = por %p2554_p5, %p2553_p2 }
  0x3a   : > { %p2549_p1 = pneg %p2548_p12 }
  0x3c   : > { %p2556_p6 = pnand %p2555_p3, %p2549_p1 }
  0x3e   : > { %2559 = shalt.err (!%p2556_p6)
}
  0x3f   : > { %s3066_s20 = smov 4   ;;  %s3067_s13 = smov 64  }
  0x40   : > { %2215 = dma.hbm_to_vmem [thread:$0]  (!%p2854_p13), %s3029_s3, 1024, %s371_s21, [#allocation4], %s3067_s13, %s3067_s13, %s3066_s20  }
  0x41   : > { %s2571_s16 = scalar_lea.vmem %s403_s24, 4096  ;;  %p2579_p8 = scmp.lt.s32.totalorder %s403_s24, %s403_s24 }
  0x42   : > { %p2572_p7 = scmp.ne.s32.totalorder %s403_s24, %s2571_s16  ;;  %p2580_p2 = scmp.lt.s32.totalorder %s2571_s16, %s2571_s16 }
  0x44   : > { %p2574_p9 = pnand %p2572_p7, %p2860_p0  ;;  %p2581_p1 = por %p2580_p2, %p2579_p8 }
  0x46   : > { %p2575_p12 = pneg %p2574_p9 }
  0x48   : > { %p2582_p5 = pnand %p2581_p1, %p2575_p12 }
  0x4a   : > { %2585 = shalt.err (!%p2582_p5)
}
  0x4b   : > { %s2710_s17 = smov 256   ;;  %s2711_s29 = smov 16  }
  0x4c   : > { %2221 = dma.hbm_to_vmem [thread:$0]  (!%p2854_p13), %s3033_s7, 4096, %s403_s24, [#allocation7], %s2710_s17, %s2710_s17, %s2711_s29  }
  0x4d   : > { %s2712_s21 = smov [#allocation11]  }
  0x4e   : > { %s434_s25 = sshll.u32 %s2712_s21, 4  ;;  %s435_s25 = int_to_ptr.vmem [resolvable:$true] %s434_s25 }
  0x4f   : > { %s2597_s30 = scalar_lea.vmem %s435_s25, 2048  ;;  %p2605_p8 = scmp.lt.s32.totalorder %s435_s25, %s435_s25 }
  0x50   : > { %p2598_p3 = scmp.ne.s32.totalorder %s435_s25, %s2597_s30  ;;  %p2606_p9 = scmp.lt.s32.totalorder %s2597_s30, %s2597_s30 }
  0x52   : > { %p2600_p6 = pnand %p2598_p3, %p2860_p0  ;;  %p2607_p12 = por %p2606_p9, %p2605_p8 }
  0x54   : > { %p2601_p7 = pneg %p2600_p6 }
  0x56   : > { %p2608_p2 = pnand %p2607_p12, %p2601_p7 }
  0x58   : > { %2611 = shalt.err (!%p2608_p2)
}
  0x59   : > { %2227 = dma.hbm_to_vmem [thread:$0]  (!%p2854_p13), %s3037_s11, 2048, %s435_s25, [#allocation10], %s3067_s13, %s3067_s13, %s3066_s20  }
  0x5a   : > { %466 = sbr.rel (%p2842_p10) target bundleno = 1356 (0x54c), region = 72 }
  0x5f   : > { %2663 = dma.done.wait (%p2846_p11), [#allocation4], 1024  }
  0x60   : > { %2665 = vsyncadd (%p2846_p11), [#allocation4], 4294966272 }
  0x61   : > { %2667 = dma.done.wait (%p2846_p11), [#allocation7], 5120  }
  0x62   : > { %2669 = vsyncadd (%p2846_p11), [#allocation7], 4294962176 }
  0x63   : > { %2671 = dma.done.wait (%p2846_p11), [#allocation10], 10240  }
  0x64   : > { %2673 = vsyncadd (%p2846_p11), [#allocation10], 4294957056  ;;  %p530_p10 = scmp.lt.s32.totalorder %s2692_s28, 1  ;;  %v2713_v0 = vmov 0.0   ;;  %vm2714_vm0 = vmmov 0   ;;  %vm593_vm1 = vcmask 1043456  }
  0x65   : > { %2144 = vmatprep.subr.bf16.mxu0 %v2713_v0  ;;  %2146 = vmatprep.mubr.msk.bf16.mxu0 %vm2714_vm0, %v2713_v0  ;;  %v542_v1 = vld [vmem:[%s3027_s1] sm:$0xf]  ;;  %vm589_vm2 = vcmask 64512   ;;  %v2307_v5 = vld [vmem:[#allocation3 + $0x30] sm:$0xff]   ;;  %v2308_v6 = vld [vmem:[#allocation3 + $0x28] sm:$0xff]   ;;  %s527_s23 = sand.u32 1, %s2684_s26  }
  0x66   : > { %s531_s22 = scalar_select %p530_p10, %s2692_s28, 1  ;;  %2150 = vmatprep.subr.bf16.mxu1 %v2713_v0  ;;  %2166 = vmatprep.mubr.msk.bf16.mxu1 %vm2714_vm0, %v2713_v0  ;;  %v595_v2 = vsel %vm593_vm1, %v542_v1, 0  ;;  %v2306_v4 = vld [vmem:[#allocation3 + $0x38] sm:$0xff]   ;;  %v2309_v7 = vld [vmem:[#allocation3 + $0x20] sm:$0xff]   ;;  %v2311_v9 = vld [vmem:[#allocation3 + $0x10] sm:$0xff]  }
  0x67   : > { %2145 = vmatpush3.bf16.msra.mxu0 %v595_v2  ;;  %2151 = vmatpush3.bf16.msra.mxu1 %v2306_v4  ;;  %v2310_v8 = vld [vmem:[#allocation3 + $0x18] sm:$0xff]   ;;  %v2312_v10 = vld [vmem:[#allocation3 + $0x8] sm:$0xff]   ;;  %v2313_v11 = vld [vmem:[#allocation3] sm:$0xff]   ;;  %s2098_s13 = sshll.u32 %s2692_s28, 4  ;;  %s528_s17 = scalar_lea.vmem [#allocation12], %s527_s23 }
  0x68   : > { %s2101_s19 = sshll.u32 %s531_s22, 3  ;;  %2170 = vmatprep.subr.bf16.mxu0 %v2713_v0  ;;  %2152 = vmatprep.subr.bf16.mxu1 %v2713_v0  ;;  %v2314_v12 = vld [vmem:[#allocation6 + $0x38] sm:$0xff]   ;;  %v2315_v13 = vld [vmem:[#allocation6 + $0x30] sm:$0xff]   ;;  %v2316_v14 = vld [vmem:[#allocation6 + $0x28] sm:$0xff]   ;;  %s1829_s29 = sshll.u32 %s528_s17, 4  ;;  %s1830_s29 = int_to_ptr.vmem [resolvable:$true] %s1829_s29 }
  0x69   : > { %s537_s20 = scalar_lea.vmem %s3026_s0, %s2101_s19  ;;  %v2317_v15 = vld [vmem:[#allocation6 + $0x20] sm:$0xff]   ;;  %v2318_v16 = vld [vmem:[#allocation6 + $0x18] sm:$0xff]   ;;  %v2319_v27 = vld [vmem:[#allocation6 + $0x10] sm:$0xff]   ;;  %s3068_s21 = sld [smem:[#allocation24_spill]] }
  0x6a   : > { %v2305_v3 = vld [vmem:[%s537_s20] sm:$0xff]   ;;  %v2320_v28 = vld [vmem:[#allocation6 + $0x8] sm:$0xff]   ;;  %s1817_s30 = scalar_lea.sflag [#allocation5], %s527_s23  ;;  %s2612_s16 = scalar_lea.vmem %s1830_s29, 16 }
  0x6b   : > { %2147 = vmatmul.mubr.msk.bf16.vlgmr.msra.gmra.mxu0 %vm589_vm2, %v2305_v3  ;;  %2153 = vmatpush3.bf16.msra.mxu1 %v2307_v5  ;;  %v1965_v17 = vld [vmem:[%s3028_s2] ss:$0 sm:$0xff]  ;;  %v2321_v29 = vld [vmem:[#allocation6] sm:$0xff]   ;;  %v2325_v43 = vld [vmem:[#allocation8 + $0xe8] ss:$16 sps:$4 sm:$0xff]   ;;  %p2613_p11 = scmp.ne.s32.totalorder %s1830_s29, %s2612_s16  ;;  %s2716_s28 = smov [#allocation12]  }
  0x6c   : > { %2186 = vmatprep.mubr.msk.bf16.mxu0 %vm2714_vm0, %v2713_v0  ;;  %2154 = vmatprep.subr.bf16.mxu1 %v2713_v0  ;;  %v1968_v30 = vld [vmem:[%s3030_s4] ss:$0 sm:$0xff]  ;;  %v2324_v40 = vld [vmem:[#allocation8 + $0xe4] ss:$16 sps:$4 sm:$0xff]   ;;  %v2322_v42 = vld [vmem:[#allocation8 + $0xe0] ss:$16 sps:$4 sm:$0xff]  }
  0x6d   : > { %2171 = vmatpush3.bf16.msra.mxu0 %v2314_v12  ;;  %v2327_v41 = vld [vmem:[#allocation8 + $0xec] ss:$16 sps:$4 sm:$0xff]   ;;  %v2330_v44 = vld [vmem:[#allocation8 + $0xc4] ss:$16 sps:$4 sm:$0xff]   ;;  %v2328_v46 = vld [vmem:[#allocation8 + $0xc0] ss:$16 sps:$4 sm:$0xff]   ;;  %p2614_p13 = pnand %p2613_p11, %p2827_p4 }
  0x6e   : > { %2172 = vmatprep.subr.bf16.mxu0 %v2713_v0  ;;  %v2333_v45 = vld [vmem:[#allocation8 + $0xcc] ss:$16 sps:$4 sm:$0xff]   ;;  %v2331_v47 = vld [vmem:[#allocation8 + $0xc8] ss:$16 sps:$4 sm:$0xff]   ;;  %v2336_v48 = vld [vmem:[#allocation8 + $0xa4] ss:$16 sps:$4 sm:$0xff]  }
  0x6f   : > { %2155 = vmatpush3.bf16.msra.mxu1 %v2308_v6  ;;  %v2339_v49 = vld [vmem:[#allocation8 + $0xac] ss:$16 sps:$4 sm:$0xff]   ;;  %v2334_v50 = vld [vmem:[#allocation8 + $0xa0] ss:$16 sps:$4 sm:$0xff]   ;;  %v2337_v51 = vld [vmem:[#allocation8 + $0xa8] ss:$16 sps:$4 sm:$0xff]   ;;  %s2986_s25 = scalar_lea.hbm %s3068_s21, %s2098_s13  ;;  %p2615_p0 = pneg %p2614_p13 }
  0x70   : > { %2156 = vmatprep.subr.bf16.mxu1 %v2713_v0  ;;  %v2342_v52 = vld [vmem:[#allocation8 + $0x84] ss:$16 sps:$4 sm:$0xff]   ;;  %v2345_v53 = vld [vmem:[#allocation8 + $0x8c] ss:$16 sps:$4 sm:$0xff]   ;;  %v2340_v54 = vld [vmem:[#allocation8 + $0x80] ss:$16 sps:$4 sm:$0xff]  }
  0x71   : > { %2173 = vmatpush3.bf16.msra.mxu0 %v2315_v13  ;;  %v2343_v55 = vld [vmem:[#allocation8 + $0x88] ss:$16 sps:$4 sm:$0xff]   ;;  %v2348_v56 = vld [vmem:[#allocation8 + $0x64] ss:$16 sps:$4 sm:$0xff]   ;;  %v2351_v57 = vld [vmem:[#allocation8 + $0x6c] ss:$16 sps:$4 sm:$0xff]  }
  0x72   : > { %2174 = vmatprep.subr.bf16.mxu0 %v2713_v0  ;;  %v2346_v58 = vld [vmem:[#allocation8 + $0x60] ss:$16 sps:$4 sm:$0xff]   ;;  %v2349_v59 = vld [vmem:[#allocation8 + $0x68] ss:$16 sps:$4 sm:$0xff]   ;;  %v2354_v60 = vld [vmem:[#allocation8 + $0x44] ss:$16 sps:$4 sm:$0xff]  }
  0x73   : > { %2157 = vmatpush3.bf16.msra.mxu1 %v2309_v7  ;;  %v2357_v61 = vld [vmem:[#allocation8 + $0x4c] ss:$16 sps:$4 sm:$0xff]   ;;  %v2352_v62 = vld [vmem:[#allocation8 + $0x40] ss:$16 sps:$4 sm:$0xff]   ;;  %v2355_v63 = vld [vmem:[#allocation8 + $0x48] ss:$16 sps:$4 sm:$0xff]  }
  0x74   : > { %2158 = vmatprep.subr.bf16.mxu1 %v2713_v0  ;;  %v2360_v1 = vld [vmem:[#allocation8 + $0x24] ss:$16 sps:$4 sm:$0xff]   ;;  %v2361_v2 = vld [vmem:[#allocation8 + $0x28] ss:$16 sps:$4 sm:$0xff]   ;;  %v2363_v3 = vld [vmem:[#allocation8 + $0x2c] ss:$16 sps:$4 sm:$0xff]  }
  0x75   : > { %2175 = vmatpush3.bf16.msra.mxu0 %v2316_v14  ;;  %v2366_v4 = vld [vmem:[#allocation8 + $0x4] ss:$16 sps:$4 sm:$0xff]   ;;  %v2369_v5 = vld [vmem:[#allocation8 + $0xc] ss:$16 sps:$4 sm:$0xff]   ;;  %v2364_v6 = vld [vmem:[#allocation8] ss:$16 sps:$4 sm:$0xff]  }
  0x76   : > { %2176 = vmatprep.subr.bf16.mxu0 %v2713_v0  ;;  %v2367_v7 = vld [vmem:[#allocation8 + $0x8] ss:$16 sps:$4 sm:$0xff]   ;;  %s2616_s24 = sshll.u32 %s2716_s28, 4  ;;  %s2617_s24 = int_to_ptr.vmem [resolvable:$false] %s2616_s24 }
  0x77   : > { %2159 = vmatpush3.bf16.msra.mxu1 %v2310_v8  ;;  %v2715_v8 = vmov 0   ;;  %s2618_s22 = scalar_lea.vmem %s2617_s24, 32  ;;  %p2619_p1 = scmp.lt.s32.totalorder %s1830_s29, %s2617_s24 }
  0x78   : > { %2160 = vmatprep.subr.bf16.mxu1 %v2713_v0  ;;  %p2620_p5 = scmp.lt.s32.totalorder %s2618_s22, %s2612_s16 }
  0x79   : > { %2177 = vmatpush3.bf16.msra.mxu0 %v2317_v15 }
  0x7a   : > { %2178 = vmatprep.subr.bf16.mxu0 %v2713_v0  ;;  %p2621_p3 = por %p2620_p5, %p2619_p1 }
  0x7b   : > { %2161 = vmatpush3.bf16.msra.mxu1 %v2311_v9  ;;  %v2372_v9 = vld [vmem:[#allocation9 + $0x74] ss:$8 sps:$4 sm:$0xff]  }
  0x7c   : > { %2162 = vmatprep.subr.bf16.mxu1 %v2713_v0  ;;  %p2622_p6 = pnand %p2621_p3, %p2615_p0 }
  0x7d   : > { %2179 = vmatpush3.bf16.msra.mxu0 %v2318_v16 }
  0x7e   : > { %2180 = vmatprep.subr.bf16.mxu0 %v2713_v0 }
  0x7f   : > { %2163 = vmatpush3.bf16.msra.mxu1 %v2312_v10  ;;  %v2375_v10 = vld [vmem:[#allocation9 + $0x174] ss:$8 sps:$4 sm:$0xff]  }
  0x80   : > { %2164 = vmatprep.subr.bf16.mxu1 %v2713_v0 }
  0x81   : > { %2181 = vmatpush3.bf16.msra.mxu0 %v2319_v27 }
  0x82   : > { %2182 = vmatprep.subr.bf16.mxu0 %v2713_v0 }
  0x83   : > { %2165 = vmatpush3.bf16.msra.mxu1 %v2313_v11  ;;  %v1977_v11 = vld [vmem:[%s3032_s6] ss:$0 sm:$0xff] }
  0x84   : > { %1074 = vmatprep.subr.bf16.mxu1 %v2324_v40  ;;  %v2393_v40 = vld [vmem:[#allocation9 + $0x144] ss:$8 sps:$4 sm:$0xff]  }
  0x85   : > { %2183 = vmatpush3.bf16.msra.mxu0 %v2320_v28  ;;  %v2370_v28 = vld [vmem:[#allocation9 + $0x70] ss:$8 sps:$4 sm:$0xff]  }
  0x86   : > { %2184 = vmatprep.subr.bf16.mxu0 %v2713_v0  ;;  %v2358_v0 = vld [vmem:[#allocation8 + $0x20] ss:$16 sps:$4 sm:$0xff]  }
  0x89   : > { %2185 = vmatpush3.bf16.msra.mxu0 %v2321_v29  ;;  %v2373_v29 = vld [vmem:[#allocation9 + $0x170] ss:$8 sps:$4 sm:$0xff]  }
  0x8a   : > { %1115 = vmatprep.subr.bf16.mxu0 %v2327_v41  ;;  %v2388_v41 = vld [vmem:[#allocation9 + $0x40] ss:$8 sps:$4 sm:$0xff]  }
 0x12b   : > { %v631_v18 = vpop.f32.mrf.mxu0 }
 0x12c   : > { %v632_v20 = vadd.f32 %v1965_v17, %v631_v18 }
 0x12d   : > { %v2148_v19 = vpop.f32.mrf.mxu0 }
 0x12e   : > { %v638_v24 = vmax.f32 %v632_v20, 0.0 }
 0x12f   : > { %v634_v21 = vpop.f32.mrf.mxu0 }
 0x130   : > { %v635_v22 = vadd.f32 %v1965_v17, %v634_v21 }
 0x131   : > { %v2149_v23 = vpop.f32.mrf.mxu0 }
 0x132   : > { %v639_v25 = vmax.f32 %v635_v22, 0.0 }
 0x134   : > { %v640_v26 = vpack.c.bf16 %v639_v25, %v638_v24 }
 0x136   : > { %2167 = vmatmul.mubr.bf16.vlgmr.msra.gmra.mxu1 %v640_v26 }
 0x137   : > { %1075 = vmatpush1.bf16.msra.mxu1 %v2322_v42  ;;  %1106 = vmatprep.mubr.bf16.mxu1 %v2715_v8  ;;  %v2391_v42 = vld [vmem:[#allocation9 + $0x140] ss:$8 sps:$4 sm:$0xff]  }
 0x138   : > { %1076 = vmatprep.subr.bf16.mxu1 %v2330_v44  ;;  %v2399_v44 = vld [vmem:[#allocation9 + $0x134] ss:$8 sps:$4 sm:$0xff]  }
 0x13b   : > { %1077 = vmatpush1.bf16.msra.mxu1 %v2328_v46  ;;  %v2397_v46 = vld [vmem:[#allocation9 + $0x130] ss:$8 sps:$4 sm:$0xff]  }
 0x13c   : > { %1078 = vmatprep.subr.bf16.mxu1 %v2336_v48  ;;  %v2405_v48 = vld [vmem:[#allocation9 + $0x124] ss:$8 sps:$4 sm:$0xff]  }
 0x13f   : > { %1079 = vmatpush1.bf16.msra.mxu1 %v2334_v50  ;;  %v2403_v50 = vld [vmem:[#allocation9 + $0x120] ss:$8 sps:$4 sm:$0xff]  }
 0x140   : > { %1080 = vmatprep.subr.bf16.mxu1 %v2342_v52  ;;  %v2411_v52 = vld [vmem:[#allocation9 + $0x114] ss:$8 sps:$4 sm:$0xff]  }
 0x143   : > { %1081 = vmatpush1.bf16.msra.mxu1 %v2340_v54  ;;  %v2409_v54 = vld [vmem:[#allocation9 + $0x110] ss:$8 sps:$4 sm:$0xff]  }
 0x144   : > { %1082 = vmatprep.subr.bf16.mxu1 %v2348_v56  ;;  %v2417_v56 = vld [vmem:[#allocation9 + $0x104] ss:$8 sps:$4 sm:$0xff]  }
 0x147   : > { %1083 = vmatpush1.bf16.msra.mxu1 %v2346_v58  ;;  %v2415_v58 = vld [vmem:[#allocation9 + $0x100] ss:$8 sps:$4 sm:$0xff]  }
 0x148   : > { %1084 = vmatprep.subr.bf16.mxu1 %v2354_v60  ;;  %v2423_v60 = vld [vmem:[#allocation9 + $0x1f4] ss:$8 sps:$4 sm:$0xff]  }
 0x14b   : > { %1085 = vmatpush1.bf16.msra.mxu1 %v2352_v62  ;;  %v2421_v62 = vld [vmem:[#allocation9 + $0x1f0] ss:$8 sps:$4 sm:$0xff]  }
 0x14c   : > { %1086 = vmatprep.subr.bf16.mxu1 %v2360_v1  ;;  %v2424_v1 = vld [vmem:[#allocation9 + $0xe0] ss:$8 sps:$4 sm:$0xff]  }
 0x14f   : > { %1087 = vmatpush1.bf16.msra.mxu1 %v2358_v0  ;;  %v2429_v0 = vld [vmem:[#allocation9 + $0x1e4] ss:$8 sps:$4 sm:$0xff]  }
 0x150   : > { %1088 = vmatprep.subr.bf16.mxu1 %v2366_v4  ;;  %v2435_v4 = vld [vmem:[#allocation9 + $0x1d4] ss:$8 sps:$4 sm:$0xff]  }
 0x153   : > { %1089 = vmatpush1.bf16.msra.mxu1 %v2364_v6  ;;  %v2433_v6 = vld [vmem:[#allocation9 + $0x1d0] ss:$8 sps:$4 sm:$0xff]  }
 0x154   : > { %1560 = vmatprep.subr.bf16.mxu1 %v2372_v9  ;;  %v2436_v9 = vld [vmem:[#allocation9 + $0xc0] ss:$8 sps:$4 sm:$0xff]  }
 0x1f6   : > { %v729_v31 = vpop.f32.mrf.mxu1 }
 0x1f7   : > { %v730_v33 = vadd.f32 %v1968_v30, %v729_v31  ;;  %v2378_v31 = vld [vmem:[#allocation9 + $0x64] ss:$8 sps:$4 sm:$0xff]  }
 0x1f8   : > { %v2168_v32 = vpop.f32.mrf.mxu1 }
 0x1f9   : > { %v736_v37 = vmax.f32 %v730_v33, 0.0  ;;  %v2381_v32 = vld [vmem:[#allocation9 + $0x164] ss:$8 sps:$4 sm:$0xff]   ;;  %v2376_v33 = vld [vmem:[#allocation9 + $0x60] ss:$8 sps:$4 sm:$0xff]  }
 0x1fa   : > { %v732_v34 = vpop.f32.mrf.mxu1 }
 0x1fb   : > { %v733_v35 = vadd.f32 %v1968_v30, %v732_v34  ;;  %v2379_v34 = vld [vmem:[#allocation9 + $0x160] ss:$8 sps:$4 sm:$0xff]  }
 0x1fc   : > { %v2169_v36 = vpop.f32.mrf.mxu1 }
 0x1fd   : > { %v737_v38 = vmax.f32 %v733_v35, 0.0  ;;  %v2384_v35 = vld [vmem:[#allocation9 + $0x54] ss:$8 sps:$4 sm:$0xff]  }
 0x1fe   : > { %v2387_v36 = vld [vmem:[#allocation9 + $0x154] ss:$8 sps:$4 sm:$0xff]  }
 0x1ff   : > { %v738_v39 = vpack.c.bf16 %v737_v38, %v736_v37  ;;  %v2382_v37 = vld [vmem:[#allocation9 + $0x50] ss:$8 sps:$4 sm:$0xff]  }
 0x200   : > { %v2385_v38 = vld [vmem:[#allocation9 + $0x150] ss:$8 sps:$4 sm:$0xff]  }
 0x201   : > { %2187 = vmatmul.mubr.bf16.vlgmr.msra.gmra.mxu0 %v738_v39  ;;  %v2390_v39 = vld [vmem:[#allocation9 + $0x44] ss:$8 sps:$4 sm:$0xff]  }
 0x202   : > { %1116 = vmatpush1.bf16.msra.mxu0 %v2325_v43  ;;  %1147 = vmatprep.mubr.bf16.mxu0 %v2715_v8  ;;  %v2396_v43 = vld [vmem:[#allocation9 + $0x34] ss:$8 sps:$4 sm:$0xff]   ;;  %v2441_v8 = vld [vmem:[#allocation9 + $0x1c4] ss:$8 sps:$4 sm:$0xff]  }
 0x203   : > { %1117 = vmatprep.subr.bf16.mxu0 %v2333_v45  ;;  %v2394_v45 = vld [vmem:[#allocation9 + $0x30] ss:$8 sps:$4 sm:$0xff]  }
 0x206   : > { %1118 = vmatpush1.bf16.msra.mxu0 %v2331_v47  ;;  %v2402_v47 = vld [vmem:[#allocation9 + $0x24] ss:$8 sps:$4 sm:$0xff]  }
 0x207   : > { %1119 = vmatprep.subr.bf16.mxu0 %v2339_v49  ;;  %v2400_v49 = vld [vmem:[#allocation9 + $0x20] ss:$8 sps:$4 sm:$0xff]  }
 0x20a   : > { %1120 = vmatpush1.bf16.msra.mxu0 %v2337_v51  ;;  %v2408_v51 = vld [vmem:[#allocation9 + $0x14] ss:$8 sps:$4 sm:$0xff]  }
 0x20b   : > { %1121 = vmatprep.subr.bf16.mxu0 %v2345_v53  ;;  %v2406_v53 = vld [vmem:[#allocation9 + $0x10] ss:$8 sps:$4 sm:$0xff]  }
 0x20e   : > { %1122 = vmatpush1.bf16.msra.mxu0 %v2343_v55  ;;  %v2414_v55 = vld [vmem:[#allocation9 + $0x4] ss:$8 sps:$4 sm:$0xff]  }
 0x20f   : > { %1123 = vmatprep.subr.bf16.mxu0 %v2351_v57  ;;  %v2412_v57 = vld [vmem:[#allocation9] ss:$8 sps:$4 sm:$0xff]  }
 0x212   : > { %1124 = vmatpush1.bf16.msra.mxu0 %v2349_v59  ;;  %v2420_v59 = vld [vmem:[#allocation9 + $0xf4] ss:$8 sps:$4 sm:$0xff]  }
 0x213   : > { %1125 = vmatprep.subr.bf16.mxu0 %v2357_v61  ;;  %v2418_v61 = vld [vmem:[#allocation9 + $0xf0] ss:$8 sps:$4 sm:$0xff]  }
 0x216   : > { %1126 = vmatpush1.bf16.msra.mxu0 %v2355_v63  ;;  %v2426_v63 = vld [vmem:[#allocation9 + $0xe4] ss:$8 sps:$4 sm:$0xff]  }
 0x217   : > { %1127 = vmatprep.subr.bf16.mxu0 %v2363_v3  ;;  %v2432_v3 = vld [vmem:[#allocation9 + $0xd4] ss:$8 sps:$4 sm:$0xff]  }
 0x21a   : > { %1128 = vmatpush1.bf16.msra.mxu0 %v2361_v2  ;;  %v2427_v2 = vld [vmem:[#allocation9 + $0x1e0] ss:$8 sps:$4 sm:$0xff]  }
 0x21b   : > { %1129 = vmatprep.subr.bf16.mxu0 %v2369_v5  ;;  %v2430_v5 = vld [vmem:[#allocation9 + $0xd0] ss:$8 sps:$4 sm:$0xff]  }
 0x21e   : > { %1130 = vmatpush1.bf16.msra.mxu0 %v2367_v7  ;;  %v2438_v7 = vld [vmem:[#allocation9 + $0xc4] ss:$8 sps:$4 sm:$0xff]  }
 0x21f   : > { %1601 = vmatprep.subr.bf16.mxu0 %v2375_v10  ;;  %v2439_v10 = vld [vmem:[#allocation9 + $0x1c0] ss:$8 sps:$4 sm:$0xff]  }
 0x2c1   : > { %v827_v12 = vpop.f32.mrf.mxu0 }
 0x2c2   : > { %v828_v14 = vadd.f32 %v1977_v11, %v827_v12  ;;  %v2447_v12 = vld [vmem:[#allocation9 + $0x1b4] ss:$8 sps:$4 sm:$0xff]  }
 0x2c3   : > { %v2188_v13 = vpop.f32.mrf.mxu0 }
 0x2c4   : > { %v834_v18 = vmax.f32 %v828_v14, 0.0  ;;  %v2442_v13 = vld [vmem:[#allocation9 + $0xb0] ss:$8 sps:$4 sm:$0xff]  }
 0x2c5   : > { %v830_v15 = vpop.f32.mrf.mxu0  ;;  %v2445_v14 = vld [vmem:[#allocation9 + $0x1b0] ss:$8 sps:$4 sm:$0xff]  }
 0x2c6   : > { %v831_v16 = vadd.f32 %v1977_v11, %v830_v15  ;;  %v2444_v11 = vld [vmem:[#allocation9 + $0xb4] ss:$8 sps:$4 sm:$0xff]   ;;  %v2450_v15 = vld [vmem:[#allocation9 + $0xa4] ss:$8 sps:$4 sm:$0xff]  }
 0x2c7   : > { %v2189_v17 = vpop.f32.mrf.mxu0 }
 0x2c8   : > { %v835_v19 = vmax.f32 %v831_v16, 0.0  ;;  %v2453_v16 = vld [vmem:[#allocation9 + $0x1a4] ss:$8 sps:$4 sm:$0xff]   ;;  %v2448_v17 = vld [vmem:[#allocation9 + $0xa0] ss:$8 sps:$4 sm:$0xff]  }
 0x2ca   : > { %v836_v20 = vmax.f32 %v834_v18, %v835_v19  ;;  %v2451_v18 = vld [vmem:[#allocation9 + $0x1a0] ss:$8 sps:$4 sm:$0xff]   ;;  %v2456_v19 = vld [vmem:[#allocation9 + $0x94] ss:$8 sps:$4 sm:$0xff]  }
 0x2cc   : > { %v837_v21 = vrot.slane %v836_v20, 4 }
 0x2ce   : > { %v838_v22 = vmax.f32 %v836_v20, %v837_v21  ;;  %v2459_v20 = vld [vmem:[#allocation9 + $0x194] ss:$8 sps:$4 sm:$0xff]   ;;  %v2454_v21 = vld [vmem:[#allocation9 + $0x90] ss:$8 sps:$4 sm:$0xff]  }
 0x2d0   : > { %v839_v23 = vrot.slane %v838_v22, 2 }
 0x2d2   : > { %v840_v24 = vmax.f32 %v838_v22, %v839_v23  ;;  %v2457_v22 = vld [vmem:[#allocation9 + $0x190] ss:$8 sps:$4 sm:$0xff]   ;;  %v2462_v23 = vld [vmem:[#allocation9 + $0x84] ss:$8 sps:$4 sm:$0xff]  }
 0x2d4   : > { %v841_v25 = vrot.slane %v840_v24, 1 }
 0x2d6   : > { %v842_v26 = vmax.f32 %v840_v24, %v841_v25  ;;  %v2465_v24 = vld [vmem:[#allocation9 + $0x184] ss:$8 sps:$4 sm:$0xff]   ;;  %v2460_v25 = vld [vmem:[#allocation9 + $0x80] ss:$8 sps:$4 sm:$0xff]  }
 0x2d8   : > { %847 = vst [vmem:[#allocation2] sm:$0x1] %v842_v26  ;;  %v2463_v26 = vld [vmem:[#allocation9 + $0x180] ss:$8 sps:$4 sm:$0xff]  }
 0x2df   : > { %v858_v27 = vld [vmem:[#allocation2] sm:$0x1] }
 0x2e0   : > { %v859_v30 = vpack.c.bf16 %v858_v27, %v858_v27  ;;  %v2466_v27 = vld [vmem:[#allocation11 + $0x78] sm:$0xff]  }
 0x2e2   : > { %1107 = vmatmul.mubr.bf16.vlgmr.msra.gmra.mxu1 %v859_v30  ;;  %1148 = vmatmul.mubr.bf16.vlgmr.msra.gmra.mxu0 %v859_v30 }
 0x2e3   : > { %1561 = vmatpush1.bf16.msra.mxu1 %v2370_v28  ;;  %1602 = vmatpush1.bf16.msra.mxu0 %v2373_v29  ;;  %v1054_v28 = vlaneseq }
 0x2e4   : > { %1562 = vmatprep.subr.bf16.mxu1 %v2378_v31  ;;  %1603 = vmatprep.subr.bf16.mxu0 %v2381_v32  ;;  %v892_v32 = vld [vmem:[%s3034_s8] sm:$0xf] }
 0x2e5   : > { %v2962_v29 = vshrl.u32 %v1054_v28, 7 }
 0x2e7   : > { %1563 = vmatpush1.bf16.msra.mxu1 %v2376_v33  ;;  %1604 = vmatpush1.bf16.msra.mxu0 %v2379_v34  ;;  %v1056_v30 = vsub.s32 0, %v2962_v29  ;;  %v1064_v31 = vsub.s32 2, %v2962_v29  ;;  %v1060_v33 = vsub.s32 1, %v2962_v29  ;;  %v1068_v34 = vsub.s32 3, %v2962_v29 }
 0x2e8   : > { %1564 = vmatprep.subr.bf16.mxu1 %v2384_v35  ;;  %1605 = vmatprep.subr.bf16.mxu0 %v2387_v36 }
 0x2e9   : > { %v1057_v35 = vrot.slane %v892_v32, %v1056_v30  ;;  %v1065_v36 = vrot.slane %v892_v32, %v1064_v31 }
 0x2eb   : > { %1565 = vmatpush1.bf16.msra.mxu1 %v2382_v37  ;;  %1606 = vmatpush1.bf16.msra.mxu0 %v2385_v38  ;;  %v1061_v37 = vrot.slane %v892_v32, %v1060_v33  ;;  %v1069_v38 = vrot.slane %v892_v32, %v1068_v34 }
 0x2ec   : > { %1566 = vmatprep.subr.bf16.mxu1 %v2390_v39  ;;  %1607 = vmatprep.subr.bf16.mxu0 %v2393_v40 }
 0x2ef   : > { %1567 = vmatpush1.bf16.msra.mxu1 %v2388_v41  ;;  %1608 = vmatpush1.bf16.msra.mxu0 %v2391_v42 }
 0x2f0   : > { %1568 = vmatprep.subr.bf16.mxu1 %v2396_v43  ;;  %1609 = vmatprep.subr.bf16.mxu0 %v2399_v44 }
 0x2f3   : > { %1569 = vmatpush1.bf16.msra.mxu1 %v2394_v45  ;;  %1610 = vmatpush1.bf16.msra.mxu0 %v2397_v46 }
 0x2f4   : > { %1570 = vmatprep.subr.bf16.mxu1 %v2402_v47  ;;  %1611 = vmatprep.subr.bf16.mxu0 %v2405_v48 }
 0x2f7   : > { %1571 = vmatpush1.bf16.msra.mxu1 %v2400_v49  ;;  %1612 = vmatpush1.bf16.msra.mxu0 %v2403_v50 }
 0x2f8   : > { %1572 = vmatprep.subr.bf16.mxu1 %v2408_v51  ;;  %1613 = vmatprep.subr.bf16.mxu0 %v2411_v52 }
 0x2fb   : > { %1573 = vmatpush1.bf16.msra.mxu1 %v2406_v53  ;;  %1614 = vmatpush1.bf16.msra.mxu0 %v2409_v54 }
 0x2fc   : > { %1574 = vmatprep.subr.bf16.mxu1 %v2414_v55  ;;  %1615 = vmatprep.subr.bf16.mxu0 %v2417_v56 }
 0x2ff   : > { %1575 = vmatpush1.bf16.msra.mxu1 %v2412_v57  ;;  %1616 = vmatpush1.bf16.msra.mxu0 %v2415_v58  ;;  %v2467_v57 = vld [vmem:[#allocation11 + $0x38] sm:$0xff]  }
 0x300   : > { %1576 = vmatprep.subr.bf16.mxu1 %v2420_v59  ;;  %1617 = vmatprep.subr.bf16.mxu0 %v2423_v60  ;;  %v2468_v60 = vld [vmem:[#allocation11 + $0x70] sm:$0xff]  }
 0x303   : > { %1577 = vmatpush2.bf16.msra.mxu1 %v2418_v61  ;;  %1618 = vmatpush2.bf16.msra.mxu0 %v2421_v62  ;;  %v2469_v61 = vld [vmem:[#allocation11 + $0x30] sm:$0xff]   ;;  %v2470_v62 = vld [vmem:[#allocation11 + $0x68] sm:$0xff]  }
 0x304   : > { %1578 = vmatprep.subr.bf16.mxu1 %v2426_v63  ;;  %1619 = vmatprep.subr.bf16.mxu0 %v2429_v0  ;;  %v2471_v63 = vld [vmem:[#allocation11 + $0x28] sm:$0xff]   ;;  %v2472_v0 = vld [vmem:[#allocation11 + $0x60] sm:$0xff]  }
 0x307   : > { %1579 = vmatpush2.bf16.msra.mxu1 %v2424_v1  ;;  %1620 = vmatpush2.bf16.msra.mxu0 %v2427_v2  ;;  %v2473_v1 = vld [vmem:[#allocation11 + $0x20] sm:$0xff]   ;;  %v2474_v2 = vld [vmem:[#allocation11 + $0x58] sm:$0xff]  }
 0x308   : > { %1580 = vmatprep.subr.bf16.mxu1 %v2432_v3  ;;  %1621 = vmatprep.subr.bf16.mxu0 %v2435_v4  ;;  %v2475_v3 = vld [vmem:[#allocation11 + $0x18] sm:$0xff]   ;;  %v2476_v4 = vld [vmem:[#allocation11 + $0x50] sm:$0xff]  }
 0x30b   : > { %1581 = vmatpush2.bf16.msra.mxu1 %v2430_v5  ;;  %1622 = vmatpush2.bf16.msra.mxu0 %v2433_v6  ;;  %v2477_v5 = vld [vmem:[#allocation11 + $0x10] sm:$0xff]   ;;  %v2478_v6 = vld [vmem:[#allocation11 + $0x48] sm:$0xff]  }
 0x30c   : > { %1582 = vmatprep.subr.bf16.mxu1 %v2438_v7  ;;  %1623 = vmatprep.subr.bf16.mxu0 %v2441_v8  ;;  %v2479_v7 = vld [vmem:[#allocation11 + $0x8] sm:$0xff]   ;;  %v2480_v8 = vld [vmem:[#allocation11 + $0x40] sm:$0xff]  }
 0x30f   : > { %1583 = vmatpush2.bf16.msra.mxu1 %v2436_v9  ;;  %1624 = vmatpush2.bf16.msra.mxu0 %v2439_v10  ;;  %v2481_v9 = vld [vmem:[#allocation11] sm:$0xff]  }
 0x310   : > { %1584 = vmatprep.subr.bf16.mxu1 %v2444_v11  ;;  %1625 = vmatprep.subr.bf16.mxu0 %v2447_v12  ;;  %v1228_v10 = vld [vmem:[%s3036_s10] sm:$0x3] }
 0x311   : > { %v1553_v11 = vrot.slane %v1228_v10, %v1056_v30  ;;  %v1557_v12 = vrot.slane %v1228_v10, %v1060_v33  ;;  %v1678_v30 = vld [vmem:[%s3038_s12] sm:$0x1] }
 0x313   : > { %1585 = vmatpush2.bf16.msra.mxu1 %v2442_v13  ;;  %1626 = vmatpush2.bf16.msra.mxu0 %v2445_v14 }
 0x314   : > { %1586 = vmatprep.subr.bf16.mxu1 %v2450_v15  ;;  %1627 = vmatprep.subr.bf16.mxu0 %v2453_v16 }
 0x317   : > { %1587 = vmatpush2.bf16.msra.mxu1 %v2448_v17  ;;  %1628 = vmatpush2.bf16.msra.mxu0 %v2451_v18 }
 0x318   : > { %1588 = vmatprep.subr.bf16.mxu1 %v2456_v19  ;;  %1629 = vmatprep.subr.bf16.mxu0 %v2459_v20 }
 0x31b   : > { %1589 = vmatpush2.bf16.msra.mxu1 %v2454_v21  ;;  %1630 = vmatpush2.bf16.msra.mxu0 %v2457_v22 }
 0x31c   : > { %1590 = vmatprep.subr.bf16.mxu1 %v2462_v23  ;;  %1631 = vmatprep.subr.bf16.mxu0 %v2465_v24 }
 0x31f   : > { %1591 = vmatpush2.bf16.msra.mxu1 %v2460_v25  ;;  %1632 = vmatpush2.bf16.msra.mxu0 %v2463_v26 }
 0x320   : > { %2122 = vmatprep.subr.bf16.mxu1 %v2466_v27 }
 0x3a2   : > { %v1108_v39 = vpop.f32.mrf.mxu1  ;;  %v1149_v40 = vpop.f32.mrf.mxu0 }
 0x3a3   : > { %v1109_v41 = vadd.f32 %v1108_v39, %v1057_v35  ;;  %v1150_v42 = vadd.f32 %v1149_v40, %v1065_v36 }
 0x3a4   : > { %v1110_v43 = vpop.f32.mrf.mxu1  ;;  %v1151_v44 = vpop.f32.mrf.mxu0 }
 0x3a5   : > { %v1111_v45 = vadd.f32 %v1110_v43, %v1061_v37  ;;  %v1152_v46 = vadd.f32 %v1151_v44, %v1069_v38  ;;  %v1156_v47 = vmax.f32 %v1109_v41, 0.0  ;;  %v1158_v48 = vmax.f32 %v1150_v42, 0.0 }
 0x3a6   : > { %v1112_v49 = vpop.f32.mrf.mxu1  ;;  %v1153_v50 = vpop.f32.mrf.mxu0 }
 0x3a7   : > { %v1157_v51 = vmax.f32 %v1111_v45, 0.0  ;;  %v1159_v52 = vmax.f32 %v1152_v46, 0.0  ;;  %v1160_v58 = vpack.c.bf16 %v1156_v47, %v1156_v47  ;;  %v1162_v59 = vpack.c.bf16 %v1158_v48, %v1158_v48 }
 0x3a8   : > { %v1113_v53 = vpop.f32.mrf.mxu1  ;;  %v1154_v54 = vpop.f32.mrf.mxu0 }
 0x3a9   : > { %v1161_v55 = vpack.c.bf16 %v1157_v51, %v1157_v51  ;;  %v1163_v56 = vpack.c.bf16 %v1159_v52, %v1159_v52 }
 0x3ab   : > { %1592 = vmatprep.mubr.bf16.mxu1 %v1161_v55  ;;  %1633 = vmatprep.mubr.bf16.mxu0 %v1163_v56 }
 0x3ac   : > { %1593 = vmatmul.mubr.bf16.vlgmr.msra.gmra.mxu1 %v1160_v58  ;;  %1634 = vmatmul.mubr.bf16.vlgmr.msra.gmra.mxu0 %v1162_v59 }
 0x3ad   : > { %2123 = vmatpush3.bf16.msra.mxu1 %v2467_v57 }
 0x3ae   : > { %2124 = vmatprep.subr.bf16.mxu1 %v2468_v60 }
 0x3b1   : > { %2125 = vmatpush3.bf16.msra.mxu1 %v2469_v61 }
 0x3b2   : > { %2126 = vmatprep.subr.bf16.mxu1 %v2470_v62 }
 0x3b5   : > { %2127 = vmatpush3.bf16.msra.mxu1 %v2471_v63 }
 0x3b6   : > { %2128 = vmatprep.subr.bf16.mxu1 %v2472_v0 }
 0x3b9   : > { %2129 = vmatpush3.bf16.msra.mxu1 %v2473_v1 }
 0x3ba   : > { %2130 = vmatprep.subr.bf16.mxu1 %v2474_v2 }
 0x3bd   : > { %2131 = vmatpush3.bf16.msra.mxu1 %v2475_v3 }
 0x3be   : > { %2132 = vmatprep.subr.bf16.mxu1 %v2476_v4 }
 0x3c1   : > { %2133 = vmatpush3.bf16.msra.mxu1 %v2477_v5 }
 0x3c2   : > { %2134 = vmatprep.subr.bf16.mxu1 %v2478_v6 }
 0x3c5   : > { %2135 = vmatpush3.bf16.msra.mxu1 %v2479_v7 }
 0x3c6   : > { %2136 = vmatprep.subr.bf16.mxu1 %v2480_v8 }
 0x3c9   : > { %2137 = vmatpush3.bf16.msra.mxu1 %v2481_v9 }
 0x46c   : > { %v1594_v13 = vpop.f32.mrf.mxu1  ;;  %v1635_v14 = vpop.f32.mrf.mxu0 }
 0x46d   : > { %v1595_v15 = vadd.f32 %v1594_v13, %v1553_v11 }
 0x46e   : > { %v1596_v16 = vpop.f32.mrf.mxu1  ;;  %v1637_v17 = vpop.f32.mrf.mxu0 }
 0x46f   : > { %v1636_v18 = vadd.f32 %v1635_v14, %v1595_v15  ;;  %v1597_v19 = vadd.f32 %v1596_v16, %v1557_v12 }
 0x470   : > { %v1598_v20 = vpop.f32.mrf.mxu1  ;;  %v1639_v21 = vpop.f32.mrf.mxu0 }
 0x471   : > { %v1638_v22 = vadd.f32 %v1637_v17, %v1597_v19  ;;  %v1642_v23 = vmax.f32 %v1636_v18, 0.0 }
 0x472   : > { %v1599_v24 = vpop.f32.mrf.mxu1  ;;  %v1640_v25 = vpop.f32.mrf.mxu0 }
 0x473   : > { %v1643_v26 = vmax.f32 %v1638_v22, 0.0  ;;  %v1644_v28 = vpack.c.bf16 %v1642_v23, %v1642_v23 }
 0x475   : > { %v1645_v27 = vpack.c.bf16 %v1643_v26, %v1643_v26 }
 0x477   : > { %1807 = vmatprep.mubr.bf16.mxu1 %v1645_v27 }
 0x478   : > { %1808 = vmatmul.mubr.bf16.vlgmr.msra.gmra.mxu1 %v1644_v28 }
 0x538   : > { %v2138_v29 = vpop.f32.mrf.mxu1 }
 0x53a   : > { %v2139_v31 = vpop.f32.mrf.mxu1 }
 0x53b   : > { %v2140_v32 = vadd.f32 %v2139_v31, %v2138_v29 }
 0x53c   : > { %v2141_v33 = vpop.f32.mrf.mxu1 }
 0x53d   : > { %v1810_v34 = vadd.f32 %v2140_v32, %v1678_v30 }
 0x53e   : > { %v2142_v35 = vpop.f32.mrf.mxu1 }
 0x53f   : > { %1815 = vst [vmem:[%s528_s17] sm:$0x1] %v1810_v34 }
 0x540   : > { %2625 = shalt.err (!%p2622_p6)
}
 0x541   : > { %s2626_s19 = scalar_lea.hbm %s2986_s25, 16  ;;  %s2630_s20 = scalar_lea.hbm %s3068_s21, 32 }
 0x542   : > { %p2627_p7 = scmp.ne.s32.totalorder %s2986_s25, %s2626_s19  ;;  %p2631_p12 = scmp.lt.s32.totalorder %s2986_s25, %s3068_s21 }
 0x543   : > { %p2632_p2 = scmp.lt.s32.totalorder %s2630_s20, %s2626_s19 }
 0x544   : > { %p2628_p8 = pnand %p2627_p7, %p2827_p4 }
 0x545   : > { %p2633_p10 = por %p2632_p2, %p2631_p12 }
 0x546   : > { %p2629_p9 = pneg %p2628_p8 }
 0x548   : > { %p2634_p11 = pnand %p2633_p10, %p2629_p9 }
 0x54a   : > { %2637 = shalt.err (!%p2634_p11)
}
 0x54b   : > { %2210 = dma.vmem_to_hbm [thread:$0]  (%p2827_p4), %s1830_s29, 16, %s2986_s25, %s1817_s30  }
 0x54c PF: > { %s3069_s27 = sld [smem:[#allocation20_spill]] }
 0x54d   : > { %s3070_s15 = sld [smem:[#allocation17_spill]] }
 0x54e   : > { %s3071_s16 = sld [smem:[#allocation22_spill]] }
 0x552   : > { %p2242_p13 = scmp.ge.s32.totalorder %s3069_s27, 2 }
 0x553   : > { %s1841_s28 = sand.u32 1, %s3070_s15  }
 0x554   : > { %p3072_p0 = scmp.ne.s32.totalorder %s3071_s16, 0  ;;  %s1842_s24 = scalar_lea.sflag [#allocation5], %s1841_s28 }
 0x556   : > { %p2229_p1 = pnand %p2242_p13, %p3072_p0 }
 0x558   : > { %p2230_p5 = pneg %p2229_p1 }
 0x55a   : > { %2675 = dma.done.wait (%p2230_p5), %s1842_s24, 16  }
 0x55b   : > { %2677 = vsyncadd (%p2230_p5), %s1842_s24, 4294967280  ;;  %s29_s30 = sadd.s32 1, %s3069_s27   ;;  %s3073_s22 = sld [smem:[#allocation18_spill]] }
 0x55c   : > { %p26_p3 = scmp.ge.s32.totalorder %s29_s30, 4   ;;  %s3074_s27 = sld [smem:[#allocation23_spill]] }
 0x55d   : > { %s3075_s28 = sld [smem:[#allocation19_spill]]  ;;  %s3077_s25 = smov %s2684_s26 }
 0x55e   : > { %s3076_s29 = sld [smem:[#allocation21_spill]]  ;;  %28 = sbr.rel (!%p26_p3) target bundleno = 9 (0x9), region = 140 }
 0x561   : > { %s3078_s26 = smov %s3073_s22 }
 0x563   :  { %1846 = vsyncpa [#allocation4], 1 }
 0x564   :  { %1848 = vsyncpa [#allocation4 + $0x1], 1 }
 0x565   :  { %1849 = vsyncpa [#allocation7], 1 }
 0x566   :  { %1850 = vsyncpa [#allocation10], 1 }
 0x567   :  { %1851 = vsyncpa [#allocation5], 1 }
 0x568   :  { %1853 = vsyncpa [#allocation5 + $0x1], 1 }

</bundles_post_ra>
